<compile_context>
chip_gen: v5e
topology: v5e:2x2
jax: 0.10.0
libtpu: 0.0.40
codegen_flags: <defaults>
</compile_context>

<pallas_src>
import math

import numpy as np
import jax
import jax.numpy as jnp
from jax import lax
from jax.experimental import pallas as pl
from jax.experimental.pallas import tpu as pltpu

# ----------------------------- config (small) -----------------------------
B = 2        # batch
W = 8        # window_size (sequence length)
E = 32       # embed_size
FF = 64      # ff_dim
VOCAB = 256  # vocab_size (small synthetic vocab instead of 50257)
EPS = 1e-5
NEG_INF = -1e30  # finite stand-in for -inf in the causal mask
N = B * W        # flattened token count


# ------------------------------ Pallas kernel ------------------------------
def _transformer_kernel(tok_ref, embed_ref, pos_ref, mask_ref,
                        wqkv_ref, bqkv_ref,
                        gamma_ref, beta_ref,
                        w1_ref, b1_ref, w2_ref, b2_ref,
                        wo1_ref, bo1_ref, wo2_ref, bo2_ref,
                        out_ref):
    # --- fused embedding gather + positional encoding -----------------------
    # One-hot x embed-table matmul = exact row gather on the MXU (no dynamic
    # indexing needed; padding_idx=0 row of the table is already zero).
    tok = tok_ref[...]                                           # (N, 1) int32
    onehot = (tok == lax.broadcasted_iota(jnp.int32, (N, VOCAB), 1)
              ).astype(jnp.float32)                              # (N, VOCAB)
    x = jnp.dot(onehot, embed_ref[...],
                preferred_element_type=jnp.float32) + pos_ref[...]   # (N, E) f32

    def mm(a_f32, w_ref):
        # Weight matmuls feed the MXU in bf16; accumulation stays f32.
        return jnp.dot(a_f32.astype(jnp.bfloat16), w_ref[...],
                       preferred_element_type=jnp.float32)

    # --- fused QKV projection: one (N,E) x (E,3E) matmul --------------------
    qkv = mm(x, wqkv_ref) + bqkv_ref[...]                        # (N, 3E) f32
    q = qkv[:, 0 * E:1 * E].astype(jnp.bfloat16)
    k = qkv[:, 1 * E:2 * E].astype(jnp.bfloat16)
    v = qkv[:, 2 * E:3 * E].astype(jnp.bfloat16)

    # --- attention over the flattened batch ----------------------------------
    # Precomputed block-diagonal (same batch element) + causal mask input.
    scores = lax.dot_general(q, k, (((1,), (1,)), ((), ())),
                             preferred_element_type=jnp.float32)  # (N, N) f32
    scores = scores * (1.0 / math.sqrt(E)) + mask_ref[...]

    # Reference uses nn.Softmax(dim=1) on the (B, Wq, Wk) tensor, i.e. softmax
    # over the *query* axis.  With the block-diagonal mask the flattened
    # query-axis softmax equals the per-batch one (cross-batch entries exp to
    # 0 and never contribute to max / sum / PV).
    m = jnp.max(scores, axis=0, keepdims=True)
    p = jnp.exp(scores - m)
    p = p * pl.reciprocal(jnp.sum(p, axis=0, keepdims=True), approx=True)
    attn = jnp.dot(p.astype(jnp.bfloat16), v,
                   preferred_element_type=jnp.float32)            # (N, E) f32

    gamma = gamma_ref[...]                                        # (N, E), pre-tiled
    beta = beta_ref[...]

    def layer_norm(h):
        # nn.LayerNorm([W, E]): normalize each batch element over its (W, E)
        # slice.  Static sublane-aligned 8-row slices; no reshapes.
        parts = []
        for b in range(B):
            hb = h[b * W:(b + 1) * W, :]                          # (W, E)
            mu = jnp.mean(hb, axis=(0, 1), keepdims=True)
            var = jnp.mean((hb - mu) * (hb - mu), axis=(0, 1), keepdims=True)
            parts.append((hb - mu) * lax.rsqrt(var + EPS))
        return jnp.concatenate(parts, axis=0) * gamma + beta

    # --- TransEncoder block ---------------------------------------------------
    resid_1 = layer_norm(attn + x)
    f = jnp.maximum(mm(resid_1, w1_ref) + b1_ref[...], 0.0)
    f = mm(f, w2_ref) + b2_ref[...]
    enc = layer_norm(resid_1 + f)

    # --- Transformer output head ---------------------------------------------
    o = jnp.maximum(mm(enc, wo1_ref) + bo1_ref[...], 0.0)
    out_ref[...] = mm(o, wo2_ref) + bo2_ref[...]                  # (N, VOCAB)


# ------------------------------ JAX glue ------------------------------
def sinusoid_table(window_sz, embed_sz):
    # Matches sinusoid_encoding() in the reference (sin/cos applied per ROW).
    pos = jnp.arange(window_sz, dtype=jnp.float32)[:, None]
    i = jnp.arange(embed_sz, dtype=jnp.float32)[None, :]
    ang = pos / jnp.power(10000.0, 2.0 * i / embed_sz)
    even_row = (jnp.arange(window_sz) % 2 == 0)[:, None]
    return jnp.where(even_row, jnp.sin(ang), jnp.cos(ang)).astype(jnp.float32)


def _block_causal_mask():
    # mask(i, j) == 0 iff query i and key j are in the same batch element AND
    # key position <= query position; NEG_INF otherwise.  Static constant.
    qi = np.arange(N)[:, None]
    kj = np.arange(N)[None, :]
    valid = ((qi // W) == (kj // W)) & ((kj % W) <= (qi % W))
    return jnp.asarray(np.where(valid, 0.0, NEG_INF), dtype=jnp.float32)


def init_params(key):
    ks = jax.random.split(key, 12)
    n = lambda k, shape, s=0.1: (s * jax.random.normal(k, shape)).astype(jnp.float32)
    embed = n(ks[0], (VOCAB, E))
    embed = embed.at[0].set(0.0)  # padding_idx=0 row is zeros
    return dict(
        embed=embed,
        wq=n(ks[1], (E, E)), bq=n(ks[2], (1, E), 0.02),
        wk=n(ks[3], (E, E)), bk=n(ks[4], (1, E), 0.02),
        wv=n(ks[5], (E, E)), bv=n(ks[6], (1, E), 0.02),
        gamma=jnp.ones((W, E), jnp.float32), beta=jnp.zeros((W, E), jnp.float32),
        w1=n(ks[7], (E, FF)), b1=n(ks[8], (1, FF), 0.02),
        w2=n(ks[9], (FF, E)), b2=jnp.zeros((1, E), jnp.float32),
        wo1=n(ks[10], (E, FF)), bo1=jnp.zeros((1, FF), jnp.float32),
        wo2=n(ks[11], (FF, VOCAB)), bo2=jnp.zeros((1, VOCAB), jnp.float32),
    )


def prepare_params(p):
    """One-time weight prep (hoisted out of the per-call path)."""
    bf16 = lambda a: a.astype(jnp.bfloat16)
    return dict(
        embed=p["embed"].astype(jnp.float32),                    # (VOCAB, E)
        pos=jnp.tile(sinusoid_table(W, E), (B, 1)),              # (N, E)
        mask=_block_causal_mask(),                               # (N, N)
        wqkv=bf16(jnp.concatenate([p["wq"], p["wk"], p["wv"]], axis=1)),  # (E, 3E)
        bqkv=jnp.concatenate([p["bq"], p["bk"], p["bv"]], axis=1),        # (1, 3E)
        gamma=jnp.tile(p["gamma"], (B, 1)),                      # (N, E)
        beta=jnp.tile(p["beta"], (B, 1)),                        # (N, E)
        w1=bf16(p["w1"]), b1=p["b1"],
        w2=bf16(p["w2"]), b2=p["b2"],
        wo1=bf16(p["wo1"]), bo1=p["bo1"],
        wo2=bf16(p["wo2"]), bo2=p["bo2"],
    )


@jax.jit
def transformer_forward(tokens, prep):
    tok_col = tokens.reshape(N, 1).astype(jnp.int32)             # (N, 1)
    args = (tok_col, prep["embed"], prep["pos"], prep["mask"],
            prep["wqkv"], prep["bqkv"], prep["gamma"], prep["beta"],
            prep["w1"], prep["b1"], prep["w2"], prep["b2"],
            prep["wo1"], prep["bo1"], prep["wo2"], prep["bo2"])

    # Untiled VMEM residency for everything (total footprint ~0.12 MB), single
    # kernel invocation, no grid, no double-buffering of loop-invariant
    # weights.  NOTE: at this toy size a single-TensorCore kernel wins on all
    # of v5e/v6e/v7x; do not shard B=2 across v7x's two cores.
    vmem_spec = pl.BlockSpec(memory_space=pltpu.MemorySpace.VMEM)

    out_flat = pl.pallas_call(
        _transformer_kernel,
        out_shape=jax.ShapeDtypeStruct((N, VOCAB), jnp.float32),
        in_specs=[vmem_spec] * len(args),
        out_specs=vmem_spec,
        cost_estimate=pl.CostEstimate(flops=1_120_000, transcendentals=320,
                                      bytes_accessed=106_000),
    )(*args)
    return out_flat.reshape(B, W, VOCAB)


# --------------------------- pure-JAX reference ---------------------------
def reference_forward(tokens, p):
    x = p["embed"][tokens] + sinusoid_table(W, E)[None]
    row = jnp.arange(W)[:, None]
    col = jnp.arange(W)[None, :]
    mask = jnp.where(col > row, NEG_INF, 0.0).astype(jnp.float32)

    def lin(h, w, b):
        return jnp.einsum("bwe,ef->bwf", h, w) + b

    q = lin(x, p["wq"], p["bq"])
    k = lin(x, p["wk"], p["bk"])
    v = lin(x, p["wv"], p["bv"])
    s = jnp.einsum("bqe,bke->bqk", q, k) / math.sqrt(E) + mask[None]
    s = s - s.max(axis=1, keepdims=True)          # softmax over dim=1 (quirk)
    pr = jnp.exp(s)
    pr = pr / pr.sum(axis=1, keepdims=True)
    attn = jnp.einsum("bqk,bke->bqe", pr, v)

    def ln(h):
        mu = h.mean(axis=(1, 2), keepdims=True)
        var = ((h - mu) ** 2).mean(axis=(1, 2), keepdims=True)
        return (h - mu) / jnp.sqrt(var + EPS) * p["gamma"] + p["beta"]

    r1 = ln(attn + x)
    f = jax.nn.relu(lin(r1, p["w1"], p["b1"]))
    f = lin(f, p["w2"], p["b2"])
    enc = ln(r1 + f)
    o = jax.nn.relu(lin(enc, p["wo1"], p["bo1"]))
    return lin(o, p["wo2"], p["bo2"])


# --------------------------------- main ---------------------------------
if __name__ == "__main__":
    key = jax.random.PRNGKey(0)
    k_tok, k_par = jax.random.split(key)
    tokens = jax.random.randint(k_tok, (B, W), 0, VOCAB, dtype=jnp.int32)
    params = init_params(k_par)
    prepared = prepare_params(params)   # built ONCE, reused every call

    out = transformer_forward(tokens, prepared)
    out = jax.block_until_ready(out)

    assert out.shape == (B, W, VOCAB)
    assert bool(jnp.all(jnp.isfinite(out)))

    ref = reference_forward(tokens, params)
    max_err = float(jnp.max(jnp.abs(out - ref)))
    assert max_err < 5e-2, f"max abs error vs reference: {max_err}"

    # second call exercises the cached (no-retrace, no-weight-prep) fast path
    out2 = jax.block_until_ready(transformer_forward(tokens, prepared))
    assert float(jnp.max(jnp.abs(out2 - out))) == 0.0

    print("KERNEL_OK")
</pallas_src>

<mosaic_0001>
module attributes {stable_mosaic.version = 11 : i64} {
  func.func @_transformer_kernel(%arg0: memref<16x1xi32, #tpu.memory_space<vmem>>, %arg1: memref<256x32xf32, #tpu.memory_space<vmem>>, %arg2: memref<16x32xf32, #tpu.memory_space<vmem>>, %arg3: memref<16x16xf32, #tpu.memory_space<vmem>>, %arg4: memref<32x96xbf16, #tpu.memory_space<vmem>>, %arg5: memref<1x96xf32, #tpu.memory_space<vmem>>, %arg6: memref<16x32xf32, #tpu.memory_space<vmem>>, %arg7: memref<16x32xf32, #tpu.memory_space<vmem>>, %arg8: memref<32x64xbf16, #tpu.memory_space<vmem>>, %arg9: memref<1x64xf32, #tpu.memory_space<vmem>>, %arg10: memref<64x32xbf16, #tpu.memory_space<vmem>>, %arg11: memref<1x32xf32, #tpu.memory_space<vmem>>, %arg12: memref<32x64xbf16, #tpu.memory_space<vmem>>, %arg13: memref<1x64xf32, #tpu.memory_space<vmem>>, %arg14: memref<64x256xbf16, #tpu.memory_space<vmem>>, %arg15: memref<1x256xf32, #tpu.memory_space<vmem>>, %arg16: memref<16x256xf32, #tpu.memory_space<vmem>>) attributes {dimension_semantics = [], scalar_prefetch = 0 : i64, scratch_operands = 0 : i64, tpu.core_type = #tpu.core_type<tc>} {
    %c0 = arith.constant 0 : index
    %c0_0 = arith.constant 0 : index
    %0 = vector.load %arg0[%c0, %c0_0] : memref<16x1xi32, #tpu.memory_space<vmem>>, vector<16x1xi32>
    %1 = tpu.iota {dimensions = array<i32: 1>} : vector<16x256xi32>
    %2 = vector.broadcast %0 : vector<16x1xi32> to vector<16x256xi32>
    %3 = arith.cmpi eq, %2, %1 : vector<16x256xi32>
    %4 = arith.extui %3 : vector<16x256xi1> to vector<16x256xi32>
    %5 = arith.sitofp %4 : vector<16x256xi32> to vector<16x256xf32>
    %c0_1 = arith.constant 0 : index
    %c0_2 = arith.constant 0 : index
    %6 = vector.load %arg1[%c0_1, %c0_2] : memref<256x32xf32, #tpu.memory_space<vmem>>, vector<256x32xf32>
    %cst = arith.constant dense<0.000000e+00> : vector<16x32xf32>
    %7 = tpu.matmul %5, %6, %cst {dimension_numbers = #tpu.dot_dimension_numbers<[1], [0], [0], [1], [0, 0, 1, 1], [], []>} : vector<16x256xf32>, vector<256x32xf32>, vector<16x32xf32> -> vector<16x32xf32>
    %c0_3 = arith.constant 0 : index
    %c0_4 = arith.constant 0 : index
    %8 = vector.load %arg2[%c0_3, %c0_4] : memref<16x32xf32, #tpu.memory_space<vmem>>, vector<16x32xf32>
    %9 = arith.addf %7, %8 : vector<16x32xf32>
    %10 = arith.truncf %9 : vector<16x32xf32> to vector<16x32xbf16>
    %c0_5 = arith.constant 0 : index
    %c0_6 = arith.constant 0 : index
    %11 = vector.load %arg4[%c0_5, %c0_6] : memref<32x96xbf16, #tpu.memory_space<vmem>>, vector<32x96xbf16>
    %cst_7 = arith.constant dense<0.000000e+00> : vector<16x96xf32>
    %12 = tpu.matmul %10, %11, %cst_7 {dimension_numbers = #tpu.dot_dimension_numbers<[1], [0], [0], [1], [0, 0, 1, 1], [], []>} : vector<16x32xbf16>, vector<32x96xbf16>, vector<16x96xf32> -> vector<16x96xf32>
    %c0_8 = arith.constant 0 : index
    %c0_9 = arith.constant 0 : index
    %13 = vector.load %arg5[%c0_8, %c0_9] : memref<1x96xf32, #tpu.memory_space<vmem>>, vector<1x96xf32>
    %14 = vector.broadcast %13 : vector<1x96xf32> to vector<16x96xf32>
    %15 = arith.addf %12, %14 : vector<16x96xf32>
    %16 = vector.extract_strided_slice %15 {offsets = [0, 0], sizes = [16, 32], strides = [1, 1]} : vector<16x96xf32> to vector<16x32xf32>
    %17 = arith.truncf %16 : vector<16x32xf32> to vector<16x32xbf16>
    %18 = vector.extract_strided_slice %15 {offsets = [0, 32], sizes = [16, 32], strides = [1, 1]} : vector<16x96xf32> to vector<16x32xf32>
    %19 = arith.truncf %18 : vector<16x32xf32> to vector<16x32xbf16>
    %20 = vector.extract_strided_slice %15 {offsets = [0, 64], sizes = [16, 32], strides = [1, 1]} : vector<16x96xf32> to vector<16x32xf32>
    %21 = arith.truncf %20 : vector<16x32xf32> to vector<16x32xbf16>
    %cst_10 = arith.constant dense<0.000000e+00> : vector<16x16xf32>
    %22 = tpu.matmul %17, %19, %cst_10 {dimension_numbers = #tpu.dot_dimension_numbers<[1], [1], [0], [0], [0, 0, 1, 0], [], []>} : vector<16x32xbf16>, vector<16x32xbf16>, vector<16x16xf32> -> vector<16x16xf32>
    %cst_11 = arith.constant 0.176776692 : f32
    %23 = vector.broadcast %cst_11 : f32 to vector<16x16xf32>
    %24 = arith.mulf %22, %23 : vector<16x16xf32>
    %c0_12 = arith.constant 0 : index
    %c0_13 = arith.constant 0 : index
    %25 = vector.load %arg3[%c0_12, %c0_13] : memref<16x16xf32, #tpu.memory_space<vmem>>, vector<16x16xf32>
    %26 = arith.addf %24, %25 : vector<16x16xf32>
    %cst_14 = arith.constant dense<0xFF800000> : vector<16xf32>
    %27 = vector.multi_reduction <maximumf>, %26, %cst_14 [0] : vector<16x16xf32> to vector<16xf32>
    %28 = vector.shape_cast %27 : vector<16xf32> to vector<1x16xf32>
    %29 = vector.broadcast %28 : vector<1x16xf32> to vector<16x16xf32>
    %30 = arith.subf %26, %29 : vector<16x16xf32>
    %31 = math.exp %30 : vector<16x16xf32>
    %cst_15 = arith.constant dense<0.000000e+00> : vector<16xf32>
    %32 = vector.multi_reduction <add>, %31, %cst_15 [0] : vector<16x16xf32> to vector<16xf32>
    %33 = vector.shape_cast %32 : vector<16xf32> to vector<1x16xf32>
    %34 = tpu.reciprocal %33 {approx = true} : vector<1x16xf32> -> vector<1x16xf32>
    %35 = vector.broadcast %34 : vector<1x16xf32> to vector<16x16xf32>
    %36 = arith.mulf %31, %35 : vector<16x16xf32>
    %37 = arith.truncf %36 : vector<16x16xf32> to vector<16x16xbf16>
    %cst_16 = arith.constant dense<0.000000e+00> : vector<16x32xf32>
    %38 = tpu.matmul %37, %21, %cst_16 {dimension_numbers = #tpu.dot_dimension_numbers<[1], [0], [0], [1], [0, 0, 1, 1], [], []>} : vector<16x16xbf16>, vector<16x32xbf16>, vector<16x32xf32> -> vector<16x32xf32>
    %c0_17 = arith.constant 0 : index
    %c0_18 = arith.constant 0 : index
    %39 = vector.load %arg6[%c0_17, %c0_18] : memref<16x32xf32, #tpu.memory_space<vmem>>, vector<16x32xf32>
    %c0_19 = arith.constant 0 : index
    %c0_20 = arith.constant 0 : index
    %40 = vector.load %arg7[%c0_19, %c0_20] : memref<16x32xf32, #tpu.memory_space<vmem>>, vector<16x32xf32>
    %41 = arith.addf %38, %9 : vector<16x32xf32>
    %42 = vector.extract_strided_slice %41 {offsets = [0, 0], sizes = [8, 32], strides = [1, 1]} : vector<16x32xf32> to vector<8x32xf32>
    %43 = vector.shape_cast %42 : vector<8x32xf32> to vector<1x8x32xf32>
    %cst_21 = arith.constant dense<0.000000e+00> : vector<1xf32>
    %44 = vector.multi_reduction <add>, %43, %cst_21 [1, 2] : vector<1x8x32xf32> to vector<1xf32>
    %45 = vector.shape_cast %44 : vector<1xf32> to vector<1x1x1xf32>
    %46 = vector.extract %45[0, 0, 0] : f32 from vector<1x1x1xf32>
    %47 = vector.broadcast %46 : f32 to vector<1x1xf32>
    %cst_22 = arith.constant 2.560000e+02 : f32
    %48 = vector.broadcast %cst_22 : f32 to vector<1x1xf32>
    %49 = arith.divf %47, %48 : vector<1x1xf32>
    %50 = vector.broadcast %49 : vector<1x1xf32> to vector<8x32xf32>
    %51 = arith.subf %42, %50 : vector<8x32xf32>
    %52 = vector.broadcast %49 : vector<1x1xf32> to vector<8x32xf32>
    %53 = arith.subf %42, %52 : vector<8x32xf32>
    %54 = arith.mulf %51, %53 : vector<8x32xf32>
    %55 = vector.shape_cast %54 : vector<8x32xf32> to vector<1x8x32xf32>
    %cst_23 = arith.constant dense<0.000000e+00> : vector<1xf32>
    %56 = vector.multi_reduction <add>, %55, %cst_23 [1, 2] : vector<1x8x32xf32> to vector<1xf32>
    %57 = vector.shape_cast %56 : vector<1xf32> to vector<1x1x1xf32>
    %58 = vector.extract %57[0, 0, 0] : f32 from vector<1x1x1xf32>
    %59 = vector.broadcast %58 : f32 to vector<1x1xf32>
    %cst_24 = arith.constant 2.560000e+02 : f32
    %60 = vector.broadcast %cst_24 : f32 to vector<1x1xf32>
    %61 = arith.divf %59, %60 : vector<1x1xf32>
    %62 = vector.broadcast %49 : vector<1x1xf32> to vector<8x32xf32>
    %63 = arith.subf %42, %62 : vector<8x32xf32>
    %cst_25 = arith.constant 9.99999974E-6 : f32
    %64 = vector.broadcast %cst_25 : f32 to vector<1x1xf32>
    %65 = arith.addf %61, %64 : vector<1x1xf32>
    %66 = math.rsqrt %65 : vector<1x1xf32>
    %67 = vector.broadcast %66 : vector<1x1xf32> to vector<8x32xf32>
    %68 = arith.mulf %63, %67 : vector<8x32xf32>
    %69 = vector.extract_strided_slice %41 {offsets = [8, 0], sizes = [8, 32], strides = [1, 1]} : vector<16x32xf32> to vector<8x32xf32>
    %70 = vector.shape_cast %69 : vector<8x32xf32> to vector<1x8x32xf32>
    %cst_26 = arith.constant dense<0.000000e+00> : vector<1xf32>
    %71 = vector.multi_reduction <add>, %70, %cst_26 [1, 2] : vector<1x8x32xf32> to vector<1xf32>
    %72 = vector.shape_cast %71 : vector<1xf32> to vector<1x1x1xf32>
    %73 = vector.extract %72[0, 0, 0] : f32 from vector<1x1x1xf32>
    %74 = vector.broadcast %73 : f32 to vector<1x1xf32>
    %cst_27 = arith.constant 2.560000e+02 : f32
    %75 = vector.broadcast %cst_27 : f32 to vector<1x1xf32>
    %76 = arith.divf %74, %75 : vector<1x1xf32>
    %77 = vector.broadcast %76 : vector<1x1xf32> to vector<8x32xf32>
    %78 = arith.subf %69, %77 : vector<8x32xf32>
    %79 = vector.broadcast %76 : vector<1x1xf32> to vector<8x32xf32>
    %80 = arith.subf %69, %79 : vector<8x32xf32>
    %81 = arith.mulf %78, %80 : vector<8x32xf32>
    %82 = vector.shape_cast %81 : vector<8x32xf32> to vector<1x8x32xf32>
    %cst_28 = arith.constant dense<0.000000e+00> : vector<1xf32>
    %83 = vector.multi_reduction <add>, %82, %cst_28 [1, 2] : vector<1x8x32xf32> to vector<1xf32>
    %84 = vector.shape_cast %83 : vector<1xf32> to vector<1x1x1xf32>
    %85 = vector.extract %84[0, 0, 0] : f32 from vector<1x1x1xf32>
    %86 = vector.broadcast %85 : f32 to vector<1x1xf32>
    %cst_29 = arith.constant 2.560000e+02 : f32
    %87 = vector.broadcast %cst_29 : f32 to vector<1x1xf32>
    %88 = arith.divf %86, %87 : vector<1x1xf32>
    %89 = vector.broadcast %76 : vector<1x1xf32> to vector<8x32xf32>
    %90 = arith.subf %69, %89 : vector<8x32xf32>
    %cst_30 = arith.constant 9.99999974E-6 : f32
    %91 = vector.broadcast %cst_30 : f32 to vector<1x1xf32>
    %92 = arith.addf %88, %91 : vector<1x1xf32>
    %93 = math.rsqrt %92 : vector<1x1xf32>
    %94 = vector.broadcast %93 : vector<1x1xf32> to vector<8x32xf32>
    %95 = arith.mulf %90, %94 : vector<8x32xf32>
    %96 = tpu.concatenate %68, %95 in 0 : vector<8x32xf32>, vector<8x32xf32> -> vector<16x32xf32>
    %97 = arith.mulf %96, %39 : vector<16x32xf32>
    %98 = arith.addf %97, %40 : vector<16x32xf32>
    %99 = arith.truncf %98 : vector<16x32xf32> to vector<16x32xbf16>
    %c0_31 = arith.constant 0 : index
    %c0_32 = arith.constant 0 : index
    %100 = vector.load %arg8[%c0_31, %c0_32] : memref<32x64xbf16, #tpu.memory_space<vmem>>, vector<32x64xbf16>
    %cst_33 = arith.constant dense<0.000000e+00> : vector<16x64xf32>
    %101 = tpu.matmul %99, %100, %cst_33 {dimension_numbers = #tpu.dot_dimension_numbers<[1], [0], [0], [1], [0, 0, 1, 1], [], []>} : vector<16x32xbf16>, vector<32x64xbf16>, vector<16x64xf32> -> vector<16x64xf32>
    %c0_34 = arith.constant 0 : index
    %c0_35 = arith.constant 0 : index
    %102 = vector.load %arg9[%c0_34, %c0_35] : memref<1x64xf32, #tpu.memory_space<vmem>>, vector<1x64xf32>
    %103 = vector.broadcast %102 : vector<1x64xf32> to vector<16x64xf32>
    %104 = arith.addf %101, %103 : vector<16x64xf32>
    %cst_36 = arith.constant 0.000000e+00 : f32
    %105 = vector.broadcast %cst_36 : f32 to vector<16x64xf32>
    %106 = arith.maximumf %104, %105 : vector<16x64xf32>
    %107 = arith.truncf %106 : vector<16x64xf32> to vector<16x64xbf16>
    %c0_37 = arith.constant 0 : index
    %c0_38 = arith.constant 0 : index
    %108 = vector.load %arg10[%c0_37, %c0_38] : memref<64x32xbf16, #tpu.memory_space<vmem>>, vector<64x32xbf16>
    %cst_39 = arith.constant dense<0.000000e+00> : vector<16x32xf32>
    %109 = tpu.matmul %107, %108, %cst_39 {dimension_numbers = #tpu.dot_dimension_numbers<[1], [0], [0], [1], [0, 0, 1, 1], [], []>} : vector<16x64xbf16>, vector<64x32xbf16>, vector<16x32xf32> -> vector<16x32xf32>
    %c0_40 = arith.constant 0 : index
    %c0_41 = arith.constant 0 : index
    %110 = vector.load %arg11[%c0_40, %c0_41] : memref<1x32xf32, #tpu.memory_space<vmem>>, vector<1x32xf32>
    %111 = vector.broadcast %110 : vector<1x32xf32> to vector<16x32xf32>
    %112 = arith.addf %109, %111 : vector<16x32xf32>
    %113 = arith.addf %98, %112 : vector<16x32xf32>
    %114 = vector.extract_strided_slice %113 {offsets = [0, 0], sizes = [8, 32], strides = [1, 1]} : vector<16x32xf32> to vector<8x32xf32>
    %115 = vector.shape_cast %114 : vector<8x32xf32> to vector<1x8x32xf32>
    %cst_42 = arith.constant dense<0.000000e+00> : vector<1xf32>
    %116 = vector.multi_reduction <add>, %115, %cst_42 [1, 2] : vector<1x8x32xf32> to vector<1xf32>
    %117 = vector.shape_cast %116 : vector<1xf32> to vector<1x1x1xf32>
    %118 = vector.extract %117[0, 0, 0] : f32 from vector<1x1x1xf32>
    %119 = vector.broadcast %118 : f32 to vector<1x1xf32>
    %cst_43 = arith.constant 2.560000e+02 : f32
    %120 = vector.broadcast %cst_43 : f32 to vector<1x1xf32>
    %121 = arith.divf %119, %120 : vector<1x1xf32>
    %122 = vector.broadcast %121 : vector<1x1xf32> to vector<8x32xf32>
    %123 = arith.subf %114, %122 : vector<8x32xf32>
    %124 = vector.broadcast %121 : vector<1x1xf32> to vector<8x32xf32>
    %125 = arith.subf %114, %124 : vector<8x32xf32>
    %126 = arith.mulf %123, %125 : vector<8x32xf32>
    %127 = vector.shape_cast %126 : vector<8x32xf32> to vector<1x8x32xf32>
    %cst_44 = arith.constant dense<0.000000e+00> : vector<1xf32>
    %128 = vector.multi_reduction <add>, %127, %cst_44 [1, 2] : vector<1x8x32xf32> to vector<1xf32>
    %129 = vector.shape_cast %128 : vector<1xf32> to vector<1x1x1xf32>
    %130 = vector.extract %129[0, 0, 0] : f32 from vector<1x1x1xf32>
    %131 = vector.broadcast %130 : f32 to vector<1x1xf32>
    %cst_45 = arith.constant 2.560000e+02 : f32
    %132 = vector.broadcast %cst_45 : f32 to vector<1x1xf32>
    %133 = arith.divf %131, %132 : vector<1x1xf32>
    %134 = vector.broadcast %121 : vector<1x1xf32> to vector<8x32xf32>
    %135 = arith.subf %114, %134 : vector<8x32xf32>
    %cst_46 = arith.constant 9.99999974E-6 : f32
    %136 = vector.broadcast %cst_46 : f32 to vector<1x1xf32>
    %137 = arith.addf %133, %136 : vector<1x1xf32>
    %138 = math.rsqrt %137 : vector<1x1xf32>
    %139 = vector.broadcast %138 : vector<1x1xf32> to vector<8x32xf32>
    %140 = arith.mulf %135, %139 : vector<8x32xf32>
    %141 = vector.extract_strided_slice %113 {offsets = [8, 0], sizes = [8, 32], strides = [1, 1]} : vector<16x32xf32> to vector<8x32xf32>
    %142 = vector.shape_cast %141 : vector<8x32xf32> to vector<1x8x32xf32>
    %cst_47 = arith.constant dense<0.000000e+00> : vector<1xf32>
    %143 = vector.multi_reduction <add>, %142, %cst_47 [1, 2] : vector<1x8x32xf32> to vector<1xf32>
    %144 = vector.shape_cast %143 : vector<1xf32> to vector<1x1x1xf32>
    %145 = vector.extract %144[0, 0, 0] : f32 from vector<1x1x1xf32>
    %146 = vector.broadcast %145 : f32 to vector<1x1xf32>
    %cst_48 = arith.constant 2.560000e+02 : f32
    %147 = vector.broadcast %cst_48 : f32 to vector<1x1xf32>
    %148 = arith.divf %146, %147 : vector<1x1xf32>
    %149 = vector.broadcast %148 : vector<1x1xf32> to vector<8x32xf32>
    %150 = arith.subf %141, %149 : vector<8x32xf32>
    %151 = vector.broadcast %148 : vector<1x1xf32> to vector<8x32xf32>
    %152 = arith.subf %141, %151 : vector<8x32xf32>
    %153 = arith.mulf %150, %152 : vector<8x32xf32>
    %154 = vector.shape_cast %153 : vector<8x32xf32> to vector<1x8x32xf32>
    %cst_49 = arith.constant dense<0.000000e+00> : vector<1xf32>
    %155 = vector.multi_reduction <add>, %154, %cst_49 [1, 2] : vector<1x8x32xf32> to vector<1xf32>
    %156 = vector.shape_cast %155 : vector<1xf32> to vector<1x1x1xf32>
    %157 = vector.extract %156[0, 0, 0] : f32 from vector<1x1x1xf32>
    %158 = vector.broadcast %157 : f32 to vector<1x1xf32>
    %cst_50 = arith.constant 2.560000e+02 : f32
    %159 = vector.broadcast %cst_50 : f32 to vector<1x1xf32>
    %160 = arith.divf %158, %159 : vector<1x1xf32>
    %161 = vector.broadcast %148 : vector<1x1xf32> to vector<8x32xf32>
    %162 = arith.subf %141, %161 : vector<8x32xf32>
    %cst_51 = arith.constant 9.99999974E-6 : f32
    %163 = vector.broadcast %cst_51 : f32 to vector<1x1xf32>
    %164 = arith.addf %160, %163 : vector<1x1xf32>
    %165 = math.rsqrt %164 : vector<1x1xf32>
    %166 = vector.broadcast %165 : vector<1x1xf32> to vector<8x32xf32>
    %167 = arith.mulf %162, %166 : vector<8x32xf32>
    %168 = tpu.concatenate %140, %167 in 0 : vector<8x32xf32>, vector<8x32xf32> -> vector<16x32xf32>
    %169 = arith.mulf %168, %39 : vector<16x32xf32>
    %170 = arith.addf %169, %40 : vector<16x32xf32>
    %171 = arith.truncf %170 : vector<16x32xf32> to vector<16x32xbf16>
    %c0_52 = arith.constant 0 : index
    %c0_53 = arith.constant 0 : index
    %172 = vector.load %arg12[%c0_52, %c0_53] : memref<32x64xbf16, #tpu.memory_space<vmem>>, vector<32x64xbf16>
    %cst_54 = arith.constant dense<0.000000e+00> : vector<16x64xf32>
    %173 = tpu.matmul %171, %172, %cst_54 {dimension_numbers = #tpu.dot_dimension_numbers<[1], [0], [0], [1], [0, 0, 1, 1], [], []>} : vector<16x32xbf16>, vector<32x64xbf16>, vector<16x64xf32> -> vector<16x64xf32>
    %c0_55 = arith.constant 0 : index
    %c0_56 = arith.constant 0 : index
    %174 = vector.load %arg13[%c0_55, %c0_56] : memref<1x64xf32, #tpu.memory_space<vmem>>, vector<1x64xf32>
    %175 = vector.broadcast %174 : vector<1x64xf32> to vector<16x64xf32>
    %176 = arith.addf %173, %175 : vector<16x64xf32>
    %cst_57 = arith.constant 0.000000e+00 : f32
    %177 = vector.broadcast %cst_57 : f32 to vector<16x64xf32>
    %178 = arith.maximumf %176, %177 : vector<16x64xf32>
    %179 = arith.truncf %178 : vector<16x64xf32> to vector<16x64xbf16>
    %c0_58 = arith.constant 0 : index
    %c0_59 = arith.constant 0 : index
    %180 = vector.load %arg14[%c0_58, %c0_59] : memref<64x256xbf16, #tpu.memory_space<vmem>>, vector<64x256xbf16>
    %cst_60 = arith.constant dense<0.000000e+00> : vector<16x256xf32>
    %181 = tpu.matmul %179, %180, %cst_60 {dimension_numbers = #tpu.dot_dimension_numbers<[1], [0], [0], [1], [0, 0, 1, 1], [], []>} : vector<16x64xbf16>, vector<64x256xbf16>, vector<16x256xf32> -> vector<16x256xf32>
    %c0_61 = arith.constant 0 : index
    %c0_62 = arith.constant 0 : index
    %182 = vector.load %arg15[%c0_61, %c0_62] : memref<1x256xf32, #tpu.memory_space<vmem>>, vector<1x256xf32>
    %183 = vector.broadcast %182 : vector<1x256xf32> to vector<16x256xf32>
    %184 = arith.addf %181, %183 : vector<16x256xf32>
    %c0_63 = arith.constant 0 : index
    %c0_64 = arith.constant 0 : index
    %185 = vector.load %arg16[%c0_63, %c0_64] : memref<16x256xf32, #tpu.memory_space<vmem>>, vector<16x256xf32>
    tpu.vector_store %arg16[%c0_63, %c0_64], %184 {strides = array<i32>} : memref<16x256xf32, #tpu.memory_space<vmem>>, vector<16x256xf32>,
    return
  }
}

</mosaic_0001>

<bundles_post_ra>
// kernel: transformer_forward.1
= control target key start
LH: loop header
LB: loop body
LE: loop exit
PB: predicated region body
PF: predicated region fallthrough
CT: control target
= control target key end

     0   :  { %s1249_s0 = inlined_call_operand.vmem [shape: s32[16,1], index: 0, kind: input, shape index: {}]   ;;  %s1250_s1 = inlined_call_operand.vmem [shape: f32[256,32], index: 1, kind: input, shape index: {}]   ;;  %s1251_s2 = inlined_call_operand.vmem [shape: f32[16,32], index: 2, kind: input, shape index: {}]   ;;  %s1252_s3 = inlined_call_operand.vmem [shape: f32[16,16], index: 3, kind: input, shape index: {}]   ;;  %s1253_s4 = inlined_call_operand.vmem [shape: bf16[32,96], index: 4, kind: input, shape index: {}]   ;;  %s1254_s5 = inlined_call_operand.vmem [shape: f32[1,96], index: 5, kind: input, shape index: {}]   ;;  %s1255_s6 = inlined_call_operand.vmem [shape: f32[16,32], index: 6, kind: input, shape index: {}]   ;;  %s1256_s7 = inlined_call_operand.vmem [shape: f32[16,32], index: 7, kind: input, shape index: {}]   ;;  %s1257_s8 = inlined_call_operand.vmem [shape: bf16[32,64], index: 8, kind: input, shape index: {}]   ;;  %s1258_s9 = inlined_call_operand.vmem [shape: f32[1,64], index: 9, kind: input, shape index: {}]   ;;  %s1259_s10 = inlined_call_operand.vmem [shape: bf16[64,32], index: 10, kind: input, shape index: {}]   ;;  %s1260_s11 = inlined_call_operand.vmem [shape: f32[1,32], index: 11, kind: input, shape index: {}]   ;;  %s1261_s12 = inlined_call_operand.vmem [shape: bf16[32,64], index: 12, kind: input, shape index: {}]   ;;  %s1262_s13 = inlined_call_operand.vmem [shape: f32[1,64], index: 13, kind: input, shape index: {}]   ;;  %s1263_s14 = inlined_call_operand.vmem [shape: bf16[64,256], index: 14, kind: input, shape index: {}]   ;;  %s1264_s15 = inlined_call_operand.vmem [shape: f32[1,256], index: 15, kind: input, shape index: {}]   ;;  %s1265_s16 = inlined_call_operand.hbm [shape: f32[16,256], index: 16, kind: output, shape index: {}]  }
   0x1   :  { %1267 = sst [smem:[#allocation5_spill]] %s1249_s0 }
   0x2   :  { %s1268_s23 = sld [smem:[#allocation5_spill]]  ;;  %v93_v1 = vld [vmem:[%s1250_s1 + $0x78] sm:$0xff]  ;;  %v869_v2 = vmov 0   ;;  %v92_v4 = vld [vmem:[%s1250_s1 + $0x70] sm:$0xff]  ;;  %v91_v6 = vld [vmem:[%s1250_s1 + $0x68] sm:$0xff] }
   0x3   :  { %822 = vset.pattern.permute.xlu0 %v869_v2  ;;  %112 = vmatpush.msra.mxu0 %v93_v1  ;;  %v109_v3 = vld [vmem:[%s1250_s1 + $0xf8] sm:$0xff]  ;;  %v108_v5 = vld [vmem:[%s1250_s1 + $0xf0] sm:$0xff]  ;;  %v107_v7 = vld [vmem:[%s1250_s1 + $0xe8] sm:$0xff] }
   0x4   :  { %135 = vmatpush.msra.mxu1 %v109_v3  ;;  %v90_v8 = vld [vmem:[%s1250_s1 + $0x60] sm:$0xff]  ;;  %v89_v10 = vld [vmem:[%s1250_s1 + $0x58] sm:$0xff]  ;;  %v88_v13 = vld [vmem:[%s1250_s1 + $0x50] sm:$0xff] }
   0x5   :  { %113 = vmatpush.msra.mxu0 %v92_v4  ;;  %v106_v9 = vld [vmem:[%s1250_s1 + $0xe0] sm:$0xff]  ;;  %v105_v12 = vld [vmem:[%s1250_s1 + $0xd8] sm:$0xff]  ;;  %v104_v14 = vld [vmem:[%s1250_s1 + $0xd0] sm:$0xff] }
   0x6   :  { %136 = vmatpush.msra.mxu1 %v108_v5  ;;  %v87_v15 = vld [vmem:[%s1250_s1 + $0x48] sm:$0xff]  ;;  %v86_v17 = vld [vmem:[%s1250_s1 + $0x40] sm:$0xff] }
   0x7   :  { %114 = vmatpush.msra.mxu0 %v91_v6  ;;  %v103_v16 = vld [vmem:[%s1250_s1 + $0xc8] sm:$0xff] }
   0x8   :  { %v55_v0 = vld [vmem:[%s1268_s23] sm:$0xff]  ;;  %137 = vmatpush.msra.mxu1 %v107_v7  ;;  %v56_v11 = vld [vmem:[%s1268_s23 + $0x8] sm:$0xff] }
   0x9   :  { %61 = vperm.xlu0 %822, %v55_v0   ;;  %115 = vmatpush.msra.mxu0 %v90_v8 }
   0xa   :  { %138 = vmatpush.msra.mxu1 %v106_v9 }
   0xb   :  { %116 = vmatpush.msra.mxu0 %v89_v10 }
   0xc   :  { %139 = vmatpush.msra.mxu1 %v105_v12 }
   0xd   :  { %117 = vmatpush.msra.mxu0 %v88_v13 }
   0xe   :  { %140 = vmatpush.msra.mxu1 %v104_v14 }
  0x11   :  { %64 = vperm.xlu0 %822, %v56_v11  }
  0x12   :  { %21 = vsyncpa [#allocation3], 0  ;;  %118 = vmatpush.msra.mxu0 %v87_v15  ;;  %v102_v18 = vld [vmem:[%s1250_s1 + $0xc0] sm:$0xff]  ;;  %141 = vmatpush.msra.mxu1 %v103_v16  ;;  %v85_v19 = vld [vmem:[%s1250_s1 + $0x38] sm:$0xff]  ;;  %v57_v35 = vlaneseq  ;;  %v870_v39 = vmov 1.0   ;;  %vm179_vm4 = vcmask 261120  }
  0x13   :  { %v101_v20 = vld [vmem:[%s1250_s1 + $0xb8] sm:$0xff]  ;;  %v84_v21 = vld [vmem:[%s1250_s1 + $0x30] sm:$0xff]  ;;  %v83_v23 = vld [vmem:[%s1250_s1 + $0x28] sm:$0xff]  ;;  %s872_s24 = smov 64   ;;  %vm227_vm5 = vcmask 130048   ;;  %vm444_vm13 = vcmask 523264  }
  0x14   :  { %119 = vmatpush.msra.mxu0 %v86_v17  ;;  %142 = vmatpush.msra.mxu1 %v102_v18  ;;  %v100_v22 = vld [vmem:[%s1250_s1 + $0xb0] sm:$0xff]  ;;  %v99_v24 = vld [vmem:[%s1250_s1 + $0xa8] sm:$0xff]  ;;  %v82_v25 = vld [vmem:[%s1250_s1 + $0x20] sm:$0xff]  ;;  %v58_v36 = vand.u32 127, %v57_v35  ;;  %s680_s26 = sshll.u32 %s1265_s16, 4  ;;  %s876_s27 = smov 16   ;;  %s681_s26 = int_to_ptr.hbm [resolvable:$true] %s680_s26 }
  0x15   :  { %v98_v26 = vld [vmem:[%s1250_s1 + $0xa0] sm:$0xff]  ;;  %v81_v27 = vld [vmem:[%s1250_s1 + $0x18] sm:$0xff]  ;;  %v80_v29 = vld [vmem:[%s1250_s1 + $0x10] sm:$0xff] }
  0x16   :  { %120 = vmatpush.msra.mxu0 %v85_v19  ;;  %143 = vmatpush.msra.mxu1 %v101_v20  ;;  %v97_v28 = vld [vmem:[%s1250_s1 + $0x98] sm:$0xff]  ;;  %v96_v30 = vld [vmem:[%s1250_s1 + $0x90] sm:$0xff]  ;;  %v79_v31 = vld [vmem:[%s1250_s1 + $0x8] sm:$0xff]  ;;  %v59_v37 = vadd.s32 128, %v58_v36 }
  0x17   :  { %v95_v32 = vld [vmem:[%s1250_s1 + $0x88] sm:$0xff]  ;;  %v78_v33 = vld [vmem:[%s1250_s1] sm:$0xff] }
  0x18   :  { %121 = vmatpush.msra.mxu0 %v84_v21  ;;  %144 = vmatpush.msra.mxu1 %v100_v22  ;;  %v94_v34 = vld [vmem:[%s1250_s1 + $0x80] sm:$0xff]  ;;  %v781_v41 = vld [vmem:[%s1253_s4 + $0x8] sm:$0xff] }
  0x19   :  { %189 = vmatpush.bf16.msra.mxu2 %v781_v41  ;;  %v780_v42 = vld [vmem:[%s1253_s4] sm:$0xff]  ;;  %v111_v46 = vld [vmem:[%s1251_s2 + $0x8] sm:$0xff] }
  0x1a   :  { %122 = vmatpush.msra.mxu0 %v83_v23  ;;  %145 = vmatpush.msra.mxu1 %v99_v24  ;;  %v110_v45 = vld [vmem:[%s1251_s2] sm:$0xff]  ;;  %s871_s2 = smov 96   ;;  %v224_v3 = vld [vmem:[%s1252_s3 + $0x8] sm:$0xff] }
  0x1b   :  { %v823_v55 = vld [vmem:[%s1254_s5] ss:$0 sm:$0xff] }
  0x1c   :  { %123 = vmatpush.msra.mxu0 %v82_v25  ;;  %146 = vmatpush.msra.mxu1 %v98_v26  ;;  %v223_v1 = vld [vmem:[%s1252_s3] sm:$0xff] }
  0x1d   :  { %190 = vmatpush.bf16.msra.mxu2 %v780_v42 }
  0x1e   :  { %124 = vmatpush.msra.mxu0 %v81_v27  ;;  %147 = vmatpush.msra.mxu1 %v97_v28 }
  0x20   :  { %125 = vmatpush.msra.mxu0 %v80_v29  ;;  %148 = vmatpush.msra.mxu1 %v96_v30 }
  0x22   :  { %126 = vmatpush.msra.mxu0 %v79_v31  ;;  %149 = vmatpush.msra.mxu1 %v95_v32 }
  0x24   :  { %127 = vmatpush.msra.mxu0 %v78_v33  ;;  %150 = vmatpush.msra.mxu1 %v94_v34 }
  0x7b   :  { %v62_v38 = vpop.permute.xlu0 %61 }
  0x7c   :  { %vm66_vm0 = vcmp.eq.s32.totalorder %v62_v38, %v58_v36  ;;  %vm67_vm1 = vcmp.eq.s32.totalorder %v62_v38, %v59_v37 }
  0x7d   :  { %696 = vmatmul.msk.f32.vlgmr.msra.gmra.mxu0 %vm66_vm0, %v870_v39  ;;  %698 = vmatmul.msk.f32.vlgmr.msra.gmra.mxu1 %vm67_vm1, %v870_v39 }
  0x83   :  { %v65_v40 = vpop.permute.xlu0 %64 }
  0x84   :  { %vm68_vm2 = vcmp.eq.s32.totalorder %v65_v40, %v58_v36  ;;  %vm69_vm3 = vcmp.eq.s32.totalorder %v65_v40, %v59_v37 }
  0x85   :  { %697 = vmatmul.msk.f32.gmra.mxu0 %vm68_vm2, %v870_v39  ;;  %699 = vmatmul.msk.f32.gmra.mxu1 %vm69_vm3, %v870_v39 }
  0xfa   :  { %v129_v43 = vpop.f32.mrf.mxu0  ;;  %v152_v44 = vpop.f32.mrf.mxu1 }
  0xfb   :  { %v130_v47 = vadd.f32 %v129_v43, %v110_v45 }
  0xfd   :  { %v1076_v51 = vadd.f32 %v152_v44, %v130_v47 }
 0x102   :  { %v132_v48 = vpop.f32.mrf.mxu0  ;;  %v155_v50 = vpop.f32.mrf.mxu1 }
 0x103   :  { %v133_v49 = vadd.f32 %v132_v48, %v111_v46  ;;  %v873_v48 = vmov 256.0  }
 0x105   :  { %v1078_v52 = vadd.f32 %v155_v50, %v133_v49 }
 0x107   :  { %v158_v53 = vpack.c.bf16 %v1078_v52, %v1076_v51 }
 0x109   :  { %708 = vmatmul.msk.bf16.vlgmr.msra.gmra.mxu2 %vm179_vm4, %v158_v53 }
 0x18c   :  { %v192_v54 = vpop.f32.mrf.mxu2 }
 0x18d   :  { %v193_v57 = vadd.f32 %v823_v55, %v192_v54 }
 0x194   :  { %v194_v56 = vpop.f32.mrf.mxu2 }
 0x195   :  { %v195_v58 = vadd.f32 %v823_v55, %v194_v56 }
 0x197   :  { %v197_v59 = vpack.c.bf16 %v195_v58, %v193_v57 }
 0x199   :  { %199 = vrot.lane.b32.xlu1 %v197_v59, %s871_s2 }
 0x1a1   :  { %260 = vrot.lane.b32.xlu1 %v197_v59, %s872_s24 }
 0x20b   :  { %v200_v60 = vpop.permute.xlu1 %199 }
 0x20c   :  { %v205_v61 = vsel %vm179_vm4, %v200_v60, 0 }
 0x20d   :  { %214 = vmatpush.bf16.xpose.msra.mxu3 %v205_v61 }
 0x213   :  { %v261_v62 = vpop.permute.xlu1 %260 }
 0x214   :  { %709 = vmatmul.msk.bf16.vlgmr.msra.gmra.mxu3 %vm179_vm4, %v197_v59  ;;  %273 = vmatpush.bf16.msrb.mxu2 %v261_v62 }
 0x297   :  { %v216_v63 = vpop.f32.mrf.mxu3 }
 0x298   :  { %v221_v0 = vmul.f32 0.17677669, %v216_v63 }
 0x29a   :  { %v225_v4 = vadd.f32 %v223_v1, %v221_v0 }
 0x29c   :  { %v228_v7 = vsel %vm227_vm5, %v225_v4, -inf }
 0x29f   :  { %v218_v2 = vpop.f32.mrf.mxu3 }
 0x2a0   :  { %v222_v5 = vmul.f32 0.17677669, %v218_v2 }
 0x2a2   :  { %v226_v6 = vadd.f32 %v224_v3, %v222_v5 }
 0x2a4   :  { %v229_v8 = vsel %vm227_vm5, %v226_v6, -inf }
 0x2a5   :  { %v230_v9 = vmax.f32 %v228_v7, %v229_v8 }
 0x2a7   :  { %v231_v10 = vrot.slane %v230_v9, 4 }
 0x2a9   :  { %v232_v11 = vmax.f32 %v230_v9, %v231_v10 }
 0x2ab   :  { %v233_v12 = vrot.slane %v232_v11, 2 }
 0x2ad   :  { %v234_v13 = vmax.f32 %v232_v11, %v233_v12 }
 0x2af   :  { %v235_v14 = vrot.slane %v234_v13, 1 }
 0x2b1   :  { %v236_v15 = vmax.f32 %v234_v13, %v235_v14 }
 0x2b3   :  { %v237_v16 = vsub.f32 %v225_v4, %v236_v15  ;;  %v238_v17 = vsub.f32 %v226_v6, %v236_v15 }
 0x2b5   :  { %v239_v18 = vmul.f32 1.442695, %v237_v16  ;;  %v241_v19 = vmul.f32 1.442695, %v238_v17 }
 0x2b7   :  { %827 = vpow2.f32 %v239_v18 }
 0x2b8   :  { %829 = vpow2.f32 %v241_v19 }
 0x2bd   :  { %v828_v20 = vpop.eup %827 }
 0x2be   :  { %v830_v21 = vpop.eup %829  ;;  %v243_v22 = vsel %vm227_vm5, %v828_v20, 0.0 }
 0x2bf   :  { %v244_v23 = vsel %vm227_vm5, %v830_v21, 0.0 }
 0x2c0   :  { %v245_v24 = vadd.f32 %v244_v23, %v243_v22 }
 0x2c2   :  { %v246_v25 = vrot.slane %v245_v24, 4 }
 0x2c4   :  { %v247_v26 = vadd.f32 %v246_v25, %v245_v24  ;;  %v783_v25 = vld [vmem:[%s1257_s8 + $0x8] sm:$0xff] }
 0x2c5   :  { %397 = vmatpush.bf16.msrb.mxu3 %v783_v25 }
 0x2c6   :  { %v248_v27 = vrot.slane %v247_v26, 2 }
 0x2c8   :  { %v249_v28 = vadd.f32 %v248_v27, %v247_v26  ;;  %v782_v26 = vld [vmem:[%s1257_s8] sm:$0xff] }
 0x2c9   :  { %398 = vmatpush.bf16.msrb.mxu3 %v782_v26 }
 0x2ca   :  { %v250_v29 = vrot.slane %v249_v28, 1 }
 0x2cc   :  { %v251_v30 = vadd.f32 %v250_v29, %v249_v28  ;;  %v787_v29 = vld [vmem:[%s1259_s10 + $0x18] sm:$0xff] }
 0x2cd   :  { %452 = vmatpush.bf16.msra.mxu2 %v787_v29 }
 0x2ce   :  { %831 = vrcp.f32 %v251_v30 }
 0x2cf   :  { %833 = vrcp.f32 %v873_v48 }
 0x2d4   :  { %v832_v31 = vpop.eup %831 }
 0x2d5   :  { %v253_v32 = vmul.f32 %v832_v31, %v828_v20  ;;  %v254_v33 = vmul.f32 %v832_v31, %v830_v21  ;;  %v834_v49 = vpop.eup %833 }
 0x2d6   :  { %v292_v50 = vmul.f32 256.0, %v834_v49  ;;  %vm296_vm6 = vweird.f32 %v834_v49 }
 0x2d7   :  { %v255_v34 = vpack.c.bf16 %v254_v33, %v253_v32 }
 0x2d9   :  { %710 = vmatmul.msk.bf16.vlgmr.msrb.gmra.mxu2 %vm227_vm5, %v255_v34 }
 0x35c   :  { %v275_v35 = vpop.f32.mrf.mxu2 }
 0x35d   :  { %v276_v36 = vadd.f32 %v275_v35, %v1076_v51  ;;  %v293_v51 = vsub.f32 1.0, %v292_v50  ;;  %v1139_v50 = vld [vmem:[%s1256_s7] sm:$0xff] }
 0x35f   :  { %v280_v37 = vsel %vm179_vm4, %v276_v36, 0.0  ;;  %v294_v53 = vmul.f32 %v834_v49, %v293_v51  ;;  %v1144_v51 = vld [vmem:[%s1256_s7 + $0x8] sm:$0xff] }
 0x360   :  { %281 = vadd.xlane.f32.xlu2 %v280_v37 }
 0x361   :  { %v295_v54 = vadd.f32 %v834_v49, %v294_v53 }
 0x364   :  { %v277_v38 = vpop.f32.mrf.mxu2 }
 0x365   :  { %v278_v39 = vadd.f32 %v277_v38, %v1078_v52  ;;  %v1103_v52 = vsel %vm296_vm6, %v834_v49, %v295_v54 }
 0x367   :  { %v325_v40 = vsel %vm179_vm4, %v278_v39, 0.0 }
 0x368   :  { %326 = vadd.xlane.f32.xlu0 %v325_v40 }
 0x3d3   :  { %v282_v41 = vpop.xlane.xlu2 %281 }
 0x3d4   :  { %v283_v42 = vrot.slane %v282_v41, 4 }
 0x3d6   :  { %v284_v43 = vadd.f32 %v283_v42, %v282_v41 }
 0x3d8   :  { %v285_v44 = vrot.slane %v284_v43, 2 }
 0x3da   :  { %v286_v45 = vadd.f32 %v285_v44, %v284_v43 }
 0x3db   :  { %v327_v60 = vpop.xlane.xlu0 %326 }
 0x3dc   :  { %v287_v46 = vrot.slane %v286_v45, 1  ;;  %v328_v61 = vrot.slane %v327_v60, 4 }
 0x3de   :  { %v288_v47 = vadd.f32 %v287_v46, %v286_v45  ;;  %v329_v62 = vadd.f32 %v328_v61, %v327_v60  ;;  %v1128_v45 = vld [vmem:[%s1255_s6] sm:$0xff] }
 0x3df   :  { %v824_v61 = vld [vmem:[%s1258_s9] ss:$0 sm:$0xff] }
 0x3e0   :  { %798 = vpush %v288_v47  ;;  %v330_v63 = vrot.slane %v329_v62, 2  ;;  %v1133_v47 = vld [vmem:[%s1255_s6 + $0x8] sm:$0xff] }
 0x3e2   :  { %v331_v3 = vadd.f32 %v330_v63, %v329_v62 }
 0x3e4   :  { %v332_v6 = vrot.slane %v331_v3, 1 }
 0x3e6   :  { %v333_v9 = vadd.f32 %v332_v6, %v331_v3 }
 0x411   :  { %s799_s3 = spop %798 }
 0x412   :  { %v290_v55 = vstv %s799_s3 }
 0x413   :  { %v298_v56 = vmul.f32 %v1103_v52, %v290_v55 }
 0x415   :  { %v1106_v57 = vsub.f32 %v276_v36, %v298_v56 }
 0x417   :  { %v300_v58 = vmul.f32 %v1106_v57, %v1106_v57 }
 0x419   :  { %v301_v59 = vsel %vm179_vm4, %v300_v58, 0.0  ;;  %v785_v58 = vld [vmem:[%s1259_s10 + $0x8] sm:$0xff] }
 0x41a   :  { %302 = vadd.xlane.f32.xlu2 %v301_v59  ;;  %v784_v59 = vld [vmem:[%s1259_s10] sm:$0xff] }
 0x48d   :  { %v303_v0 = vpop.xlane.xlu2 %302 }
 0x48e   :  { %v304_v1 = vrot.slane %v303_v0, 4 }
 0x490   :  { %v305_v2 = vadd.f32 %v304_v1, %v303_v0 }
 0x492   :  { %v306_v4 = vrot.slane %v305_v2, 2 }
 0x494   :  { %v307_v5 = vadd.f32 %v306_v4, %v305_v2  ;;  %v825_v4 = vld [vmem:[%s1260_s11] ss:$0 sm:$0xff] }
 0x496   :  { %v308_v7 = vrot.slane %v307_v5, 1 }
 0x498   :  { %v309_v8 = vadd.f32 %v308_v7, %v307_v5 }
 0x49a   :  { %800 = vpush %v309_v8 }
 0x49b   :  { %802 = vpush %v333_v9 }
 0x4cb   :  { %s801_s28 = spop %800 }
 0x4cc   :  { %s803_s29 = spop %802  ;;  %v311_v22 = vstv %s801_s28 }
 0x4cd   :  { %v335_v10 = vstv %s803_s29  ;;  %v312_v23 = vmul.f32 %v311_v22, %v1103_v52 }
 0x4ce   :  { %v336_v11 = vmul.f32 %v335_v10, %v1103_v52 }
 0x4cf   :  { %v313_v24 = vadd.f32 1e-05, %v312_v23 }
 0x4d0   :  { %v337_v12 = vsub.f32 %v278_v39, %v336_v11 }
 0x4d1   :  { %835 = vrsqrt.f32 %v313_v24  ;;  %vm320_vm8 = vweird.f32 %v313_v24 }
 0x4d2   :  { %v338_v13 = vmul.f32 %v337_v12, %v337_v12 }
 0x4d4   :  { %v339_v14 = vsel %vm179_vm4, %v338_v13, 0.0 }
 0x4d5   :  { %340 = vadd.xlane.f32.xlu1 %v339_v14 }
 0x4d7   :  { %v836_v27 = vpop.eup %835 }
 0x4d8   :  { %v315_v28 = vmul.f32 %v836_v27, %v313_v24  ;;  %vm321_vm7 = vweird.f32 %v836_v27 }
 0x4d9   :  { %vm322_vm9 = vmor %vm320_vm8, %vm321_vm7 }
 0x4da   :  { %v316_v30 = vmul.f32 %v836_v27, %v315_v28 }
 0x4dc   :  { %v317_v34 = vmul.f32 0.5, %v316_v30 }
 0x4de   :  { %v318_v35 = vsub.f32 1.5, %v317_v34 }
 0x4e0   :  { %v319_v37 = vmul.f32 %v836_v27, %v318_v35 }
 0x4e2   :  { %v323_v40 = vsel %vm322_vm9, %v836_v27, %v319_v37 }
 0x4e3   :  { %v324_v43 = vmul.f32 %v323_v40, %v1106_v57  ;;  %v786_v57 = vld [vmem:[%s1259_s10 + $0x10] sm:$0xff] }
 0x4e4   :  { %453 = vmatpush.bf16.msra.mxu2 %v786_v57 }
 0x4e5   :  { %v363_v49 = vmul.f32 %v324_v43, %v1128_v45 }
 0x4e7   :  { %v365_v54 = vadd.f32 %v363_v49, %v1139_v50 }
 0x4e8   :  { %454 = vmatpush.bf16.msra.mxu2 %v785_v58 }
 0x4ec   :  { %455 = vmatpush.bf16.msra.mxu2 %v784_v59  ;;  %v789_v59 = vld [vmem:[%s1261_s12 + $0x8] sm:$0xff] }
 0x4ed   :  { %574 = vmatpush.bf16.msra.mxu3 %v789_v59 }
 0x548   :  { %v341_v15 = vpop.xlane.xlu1 %340 }
 0x549   :  { %v342_v16 = vrot.slane %v341_v15, 4 }
 0x54b   :  { %v343_v17 = vadd.f32 %v342_v16, %v341_v15 }
 0x54d   :  { %v344_v18 = vrot.slane %v343_v17, 2 }
 0x54f   :  { %v345_v19 = vadd.f32 %v344_v18, %v343_v17 }
 0x551   :  { %v346_v20 = vrot.slane %v345_v19, 1 }
 0x553   :  { %v347_v21 = vadd.f32 %v346_v20, %v345_v19 }
 0x555   :  { %804 = vpush %v347_v21 }
 0x586   :  { %s805_s18 = spop %804 }
 0x587   :  { %v349_v31 = vstv %s805_s18 }
 0x588   :  { %v350_v32 = vmul.f32 %v349_v31, %v1103_v52 }
 0x58a   :  { %v351_v33 = vadd.f32 1e-05, %v350_v32 }
 0x58c   :  { %837 = vrsqrt.f32 %v351_v33  ;;  %vm358_vm11 = vweird.f32 %v351_v33 }
 0x592   :  { %v838_v36 = vpop.eup %837 }
 0x593   :  { %v353_v38 = vmul.f32 %v838_v36, %v351_v33  ;;  %vm359_vm10 = vweird.f32 %v838_v36 }
 0x594   :  { %vm360_vm12 = vmor %vm358_vm11, %vm359_vm10 }
 0x595   :  { %v354_v39 = vmul.f32 %v838_v36, %v353_v38 }
 0x597   :  { %v355_v41 = vmul.f32 0.5, %v354_v39 }
 0x599   :  { %v356_v42 = vsub.f32 1.5, %v355_v41 }
 0x59b   :  { %v357_v44 = vmul.f32 %v838_v36, %v356_v42 }
 0x59d   :  { %v361_v46 = vsel %vm360_vm12, %v838_v36, %v357_v44 }
 0x59e   :  { %v362_v48 = vmul.f32 %v361_v46, %v337_v12 }
 0x5a0   :  { %v364_v53 = vmul.f32 %v362_v48, %v1133_v47 }
 0x5a2   :  { %v366_v55 = vadd.f32 %v364_v53, %v1144_v51 }
 0x5a4   :  { %v367_v56 = vpack.c.bf16 %v366_v55, %v365_v54 }
 0x5a6   :  { %719 = vmatmul.msk.bf16.vlgmr.msrb.gmra.mxu3 %vm179_vm4, %v367_v56 }
 0x629   :  { %v400_v60 = vpop.f32.mrf.mxu3 }
 0x62a   :  { %v401_v62 = vadd.f32 %v824_v61, %v400_v60 }
 0x62c   :  { %v405_v1 = vmax.f32 %v401_v62, 0.0 }
 0x631   :  { %v402_v63 = vpop.f32.mrf.mxu3 }
 0x632   :  { %v403_v0 = vadd.f32 %v824_v61, %v402_v63  ;;  %v788_v61 = vld [vmem:[%s1261_s12] sm:$0xff]  ;;  %v772_v63 = vld [vmem:[%s1263_s14 + $0x30] sm:$0xf] }
 0x633   :  { %575 = vmatpush.bf16.msra.mxu3 %v788_v61 }
 0x634   :  { %v406_v2 = vmax.f32 %v403_v0, 0.0  ;;  %v797_v0 = vld [vmem:[%s1263_s14 + $0x34] sm:$0xf0] }
 0x636   :  { %v407_v3 = vpack.c.bf16 %v406_v2, %v405_v1  ;;  %v796_v1 = vld [vmem:[%s1263_s14 + $0x34] sm:$0xf] }
 0x638   :  { %736 = vmatmul.msk.bf16.vlgmr.msra.gmra.mxu2 %vm444_vm13, %v407_v3 }
 0x6bb   :  { %v457_v5 = vpop.f32.mrf.mxu2 }
 0x6bc   :  { %v458_v6 = vadd.f32 %v825_v4, %v457_v5  ;;  %v774_v5 = vld [vmem:[%s1263_s14 + $0x38] sm:$0xf0] }
 0x6be   :  { %v462_v7 = vadd.f32 %v458_v6, %v365_v54 }
 0x6c0   :  { %v464_v8 = vsel %vm179_vm4, %v462_v7, 0.0 }
 0x6c1   :  { %465 = vadd.xlane.f32.xlu2 %v464_v8 }
 0x6c3   :  { %v459_v19 = vpop.f32.mrf.mxu2 }
 0x6c4   :  { %v460_v21 = vadd.f32 %v825_v4, %v459_v19  ;;  %v773_v4 = vor.u32 %v797_v0, %v772_v63 }
 0x6c6   :  { %v463_v23 = vadd.f32 %v460_v21, %v366_v55  ;;  %646 = vmatpush.bf16.msrb.mxu0 %v773_v4 }
 0x6c8   :  { %v502_v24 = vsel %vm179_vm4, %v463_v23, 0.0 }
 0x734   :  { %v466_v9 = vpop.xlane.xlu2 %465 }
 0x735   :  { %v467_v10 = vrot.slane %v466_v9, 4 }
 0x737   :  { %v468_v11 = vadd.f32 %v467_v10, %v466_v9 }
 0x739   :  { %v469_v12 = vrot.slane %v468_v11, 2 }
 0x73b   :  { %v470_v13 = vadd.f32 %v469_v12, %v468_v11 }
 0x73d   :  { %v471_v14 = vrot.slane %v470_v13, 1 }
 0x73f   :  { %v472_v15 = vadd.f32 %v471_v14, %v470_v13 }
 0x741   :  { %806 = vpush %v472_v15 }
 0x772   :  { %s807_s9 = spop %806 }
 0x773   :  { %v474_v16 = vstv %s807_s9 }
 0x774   :  { %v475_v17 = vmul.f32 %v474_v16, %v1103_v52 }
 0x776   :  { %v1168_v18 = vsub.f32 %v462_v7, %v475_v17  ;;  %v777_v7 = vor.u32 %v796_v1, %v774_v5 }
 0x778   :  { %v477_v20 = vmul.f32 %v1168_v18, %v1168_v18  ;;  %660 = vmatpush.bf16.msrb.mxu1 %v777_v7 }
 0x77a   :  { %v478_v22 = vsel %vm179_vm4, %v477_v20, 0.0 }
 0x77b   :  { %479 = vadd.xlane.f32.xlu2 %v478_v22 }
 0x783   :  { %503 = vadd.xlane.f32.xlu2 %v502_v24 }
 0x7ee   :  { %v480_v25 = vpop.xlane.xlu2 %479 }
 0x7ef   :  { %v481_v26 = vrot.slane %v480_v25, 4 }
 0x7f1   :  { %v482_v27 = vadd.f32 %v481_v26, %v480_v25 }
 0x7f3   :  { %v483_v28 = vrot.slane %v482_v27, 2 }
 0x7f5   :  { %v484_v29 = vadd.f32 %v483_v28, %v482_v27  ;;  %v795_v27 = vld [vmem:[%s1263_s14 + $0x24] sm:$0xf0]  ;;  %v756_v28 = vld [vmem:[%s1263_s14 + $0x10] sm:$0xf] }
 0x7f6   :  { %v504_v30 = vpop.xlane.xlu2 %503 }
 0x7f7   :  { %v505_v31 = vrot.slane %v504_v30, 4  ;;  %v485_v32 = vrot.slane %v484_v29, 1 }
 0x7f9   :  { %v506_v33 = vadd.f32 %v505_v31, %v504_v30  ;;  %v486_v34 = vadd.f32 %v485_v32, %v484_v29  ;;  %v793_v29 = vld [vmem:[%s1263_s14 + $0x14] sm:$0xf0]  ;;  %v792_v30 = vld [vmem:[%s1263_s14 + $0x14] sm:$0xf]  ;;  %v758_v32 = vld [vmem:[%s1263_s14 + $0x18] sm:$0xf0] }
 0x7fa   :  { %v757_v31 = vor.u32 %v793_v29, %v756_v28 }
 0x7fb   :  { %v507_v35 = vrot.slane %v506_v33, 2  ;;  %808 = vpush %v486_v34  ;;  %v748_v34 = vld [vmem:[%s1263_s14] sm:$0xf] }
 0x7fd   :  { %v508_v36 = vadd.f32 %v507_v35, %v506_v33  ;;  %v761_v33 = vor.u32 %v792_v30, %v758_v32  ;;  %v791_v35 = vld [vmem:[%s1263_s14 + $0x4] sm:$0xf0] }
 0x7ff   :  { %v509_v37 = vrot.slane %v508_v36, 1 }
 0x801   :  { %v510_v38 = vadd.f32 %v509_v37, %v508_v36  ;;  %v790_v36 = vld [vmem:[%s1263_s14 + $0x4] sm:$0xf]  ;;  %v749_v37 = vor.u32 %v791_v35, %v748_v34 }
 0x803   :  { %810 = vpush %v510_v38  ;;  %v750_v38 = vld [vmem:[%s1263_s14 + $0x8] sm:$0xf0] }
 0x82c   :  { %s809_s10 = spop %808 }
 0x82d   :  { %v488_v56 = vstv %s809_s10 }
 0x82e   :  { %v489_v57 = vmul.f32 %v488_v56, %v1103_v52 }
 0x830   :  { %v490_v58 = vadd.f32 1e-05, %v489_v57 }
 0x832   :  { %839 = vrsqrt.f32 %v490_v58  ;;  %vm497_vm15 = vweird.f32 %v490_v58 }
 0x834   :  { %s811_s11 = spop %810 }
 0x835   :  { %v512_v39 = vstv %s811_s11 }
 0x836   :  { %v513_v40 = vmul.f32 %v512_v39, %v1103_v52  ;;  %v753_v39 = vor.u32 %v790_v36, %v750_v38 }
 0x838   :  { %v514_v41 = vsub.f32 %v463_v23, %v513_v40  ;;  %v840_v60 = vpop.eup %839 }
 0x839   :  { %v492_v62 = vmul.f32 %v840_v60, %v490_v58  ;;  %vm498_vm14 = vweird.f32 %v840_v60 }
 0x83a   :  { %v515_v42 = vmul.f32 %v514_v41, %v514_v41  ;;  %vm499_vm0 = vmor %vm497_vm15, %vm498_vm14 }
 0x83b   :  { %v493_v2 = vmul.f32 %v840_v60, %v492_v62 }
 0x83c   :  { %v516_v43 = vsel %vm179_vm4, %v515_v42, 0.0 }
 0x83d   :  { %517 = vadd.xlane.f32.xlu2 %v516_v43  ;;  %v494_v9 = vmul.f32 0.5, %v493_v2 }
 0x83f   :  { %v495_v10 = vsub.f32 1.5, %v494_v9 }
 0x841   :  { %v496_v12 = vmul.f32 %v840_v60, %v495_v10 }
 0x843   :  { %v500_v15 = vsel %vm499_vm0, %v840_v60, %v496_v12 }
 0x8b0   :  { %v518_v44 = vpop.xlane.xlu2 %517 }
 0x8b1   :  { %v519_v46 = vrot.slane %v518_v44, 4 }
 0x8b3   :  { %v520_v48 = vadd.f32 %v519_v46, %v518_v44 }
 0x8b5   :  { %v521_v49 = vrot.slane %v520_v48, 2 }
 0x8b7   :  { %v522_v53 = vadd.f32 %v521_v49, %v520_v48 }
 0x8b9   :  { %v523_v54 = vrot.slane %v522_v53, 1 }
 0x8bb   :  { %v524_v55 = vadd.f32 %v523_v54, %v522_v53  ;;  %v593_v53 = vld [vmem:[%s1264_s15] sm:$0x3]  ;;  %s875_s15 = smov 256  }
 0x8bc   :  { %v595_v54 = vperm.slane %v593_v53, 0 }
 0x8bd   :  { %812 = vpush %v524_v55  ;;  %v596_v55 = vperm.slane %v593_v53, 1 }
 0x8ee   :  { %s813_s20 = spop %812 }
 0x8ef   :  { %v526_v3 = vstv %s813_s20 }
 0x8f0   :  { %v527_v6 = vmul.f32 %v526_v3, %v1103_v52  ;;  %v501_v52 = vmul.f32 %v500_v15, %v1168_v18  ;;  %v764_v18 = vld [vmem:[%s1263_s14 + $0x20] sm:$0xf] }
 0x8f2   :  { %v528_v8 = vadd.f32 1e-05, %v527_v6  ;;  %v540_v21 = vmul.f32 %v501_v52, %v1128_v45  ;;  %v794_v45 = vld [vmem:[%s1263_s14 + $0x24] sm:$0xf] }
 0x8f4   :  { %841 = vrsqrt.f32 %v528_v8  ;;  %vm535_vm2 = vweird.f32 %v528_v8  ;;  %v542_v24 = vadd.f32 %v540_v21, %v1139_v50  ;;  %v766_v50 = vld [vmem:[%s1263_s14 + $0x28] sm:$0xf0] }
 0x8fa   :  { %v842_v11 = vpop.eup %841 }
 0x8fb   :  { %v530_v13 = vmul.f32 %v842_v11, %v528_v8  ;;  %vm536_vm1 = vweird.f32 %v842_v11 }
 0x8fc   :  { %vm537_vm3 = vmor %vm535_vm2, %vm536_vm1 }
 0x8fd   :  { %v531_v14 = vmul.f32 %v842_v11, %v530_v13 }
 0x8ff   :  { %v532_v16 = vmul.f32 0.5, %v531_v14 }
 0x901   :  { %v533_v17 = vsub.f32 1.5, %v532_v16 }
 0x903   :  { %v534_v19 = vmul.f32 %v842_v11, %v533_v17 }
 0x905   :  { %v538_v20 = vsel %vm537_vm3, %v842_v11, %v534_v19 }
 0x906   :  { %v539_v22 = vmul.f32 %v538_v20, %v514_v41  ;;  %v826_v41 = vld [vmem:[%s1262_s13] ss:$0 sm:$0xff]  ;;  %s874_s13 = smov [#allocation2]  }
 0x907   :  { %s678_s25 = sshll.u32 %s874_s13, 4  ;;  %s679_s25 = int_to_ptr.vmem [resolvable:$true] %s678_s25 }
 0x908   :  { %v541_v23 = vmul.f32 %v539_v22, %v1133_v47  ;;  %v765_v47 = vor.u32 %v795_v27, %v764_v18 }
 0x90a   :  { %v543_v25 = vadd.f32 %v541_v23, %v1144_v51  ;;  %v769_v51 = vor.u32 %v794_v45, %v766_v50  ;;  %647 = vmatpush.bf16.msrb.mxu0 %v765_v47 }
 0x90c   :  { %v544_v26 = vpack.c.bf16 %v543_v25, %v542_v24  ;;  %661 = vmatpush.bf16.msrb.mxu1 %v769_v51 }
 0x90e   :  { %745 = vmatmul.msk.bf16.vlgmr.msra.gmra.mxu3 %vm179_vm4, %v544_v26  ;;  %648 = vmatpush.bf16.msrb.mxu0 %v757_v31 }
 0x910   :  { %662 = vmatpush.bf16.msrb.mxu1 %v761_v33 }
 0x912   :  { %649 = vmatpush.bf16.msrb.mxu0 %v749_v37 }
 0x914   :  { %663 = vmatpush.bf16.msrb.mxu1 %v753_v39 }
 0x991   :  { %v577_v40 = vpop.f32.mrf.mxu3 }
 0x992   :  { %v578_v42 = vadd.f32 %v826_v41, %v577_v40 }
 0x994   :  { %v582_v46 = vmax.f32 %v578_v42, 0.0 }
 0x999   :  { %v579_v43 = vpop.f32.mrf.mxu3 }
 0x99a   :  { %v580_v44 = vadd.f32 %v826_v41, %v579_v43 }
 0x99c   :  { %v583_v48 = vmax.f32 %v580_v44, 0.0 }
 0x99e   :  { %v584_v49 = vpack.c.bf16 %v583_v48, %v582_v46 }
 0x9a0   :  { %778 = vmatmul.msk.bf16.vlgmr.msrb.gmra.mxu0 %vm444_vm13, %v584_v49  ;;  %779 = vmatmul.msk.bf16.vlgmr.msrb.gmra.mxu1 %vm444_vm13, %v584_v49 }
 0xa1d   :  { %v651_v56 = vpop.f32.mrf.mxu0  ;;  %v665_v57 = vpop.f32.mrf.mxu1 }
 0xa1e   :  { %v652_v58 = vadd.f32 %v651_v56, %v595_v54  ;;  %v666_v59 = vadd.f32 %v665_v57, %v596_v55 }
 0xa20   :  { %670 = vst [vmem:[#allocation2] sm:$0xff] %v652_v58 }
 0xa21   :  { %671 = vst [vmem:[#allocation2 + $0x8] sm:$0xff] %v666_v59 }
 0xa25   :  { %v653_v60 = vpop.f32.mrf.mxu0  ;;  %v667_v61 = vpop.f32.mrf.mxu1 }
 0xa26   :  { %v654_v62 = vadd.f32 %v653_v60, %v595_v54  ;;  %v668_v63 = vadd.f32 %v667_v61, %v596_v55 }
 0xa28   :  { %672 = vst [vmem:[#allocation2 + $0x10] sm:$0xff] %v654_v62 }
 0xa29   :  { %673 = vst [vmem:[#allocation2 + $0x18] sm:$0xff] %v668_v63 }
 0xa2a   :  { %686 = dma.vmem_to_hbm [thread:$0]  %s679_s25, 512, %s681_s26, [#allocation3], %s875_s15, %s875_s15, %s876_s27  }
 0xa2b   :  { %867 = dma.done.wait [#allocation3], 512  }
 0xa2c   :  { %868 = vsyncadd [#allocation3], 4294966784 }
 0xa2d   :  { %691 = vsyncpa [#allocation3], 1 }

</bundles_post_ra>
